<compile_context>
chip_gen: v6e
topology: v6e:2x2x1
jax: 0.10.0
libtpu: 0.0.40
codegen_flags: <defaults>
</compile_context>

<pallas_src>
import numpy as np
import jax
import jax.numpy as jnp
from jax.experimental import pallas as pl
from jax.experimental.pallas import tpu as pltpu

BN_EPS = 1e-5


def _round_up(v, m):
    return (v + m - 1) // m * m


def _stats_kernel(x_ref, w_ref, sum_ref, sq_ref):
    """Accumulate per-channel sum / sum-of-squares of y = x @ W.

    x_ref: (4, TR, Cin) bf16     w_ref: (Cin, CoutP) bf16
    sum_ref / sq_ref: (1, 8, CoutP) f32 -- resident across the row-tile axis,
    one independent partial per stats shard (leading "parallel" grid axis).
    Keeping an (8, CoutP) partial makes the per-step reduction elementwise
    vreg adds on the VPU; the final 8 -> 1 cross-sublane reduce is done once
    in the wrapper.
    """
    @pl.when(pl.program_id(1) == 0)
    def _():
        sum_ref[...] = jnp.zeros_like(sum_ref)
        sq_ref[...] = jnp.zeros_like(sq_ref)

    f, tr, cin = x_ref.shape
    # One fused (4*TR, Cin) matmul; reshape is free (TR % 16 == 0 for bf16).
    y = jnp.dot(x_ref[...].reshape(f * tr, cin), w_ref[...],
                preferred_element_type=jnp.float32)           # (4*TR, CoutP)
    yr = y.reshape((f * tr) // 8, 8, -1)                      # tile-preserving
    sum_ref[...] += yr.sum(axis=0)[None]                      # VPU-only adds
    sq_ref[...] += (yr * yr).sum(axis=0)[None]


def _apply_kernel(x_ref, w_ref, scale_ref, shift_ref, o_ref):
    """y = x @ W; folded BN+pool (y*scale + shift) -> ReLU -> sum of 4 pixels."""
    f, tr, cin = x_ref.shape
    y = jnp.dot(x_ref[...].reshape(f * tr, cin), w_ref[...],
                preferred_element_type=jnp.float32)           # (4*TR, CoutP)
    t = jnp.maximum(y * scale_ref[...] + shift_ref[...], 0.0)
    # 2x2 average pool: the 1/4 is already folded into scale/shift, so pooling
    # is just the sum of the 4 window pixels (elementwise vreg adds).
    o_ref[...] = t.reshape(f, tr, -1).sum(axis=0).astype(o_ref.dtype)


def transition_layer(x_nchw, conv_w, gamma, beta, *,
                     tile_rows=512, compute_dtype=jnp.bfloat16,
                     out_dtype=jnp.float32, num_stats_shards=2):
    """x_nchw: (N, Cin, H, W) f32; conv_w: (Cout, Cin, 1, 1); gamma/beta: (Cout,).
    Returns (N, Cout, H//2, W//2) in `out_dtype` using training-mode BN stats."""
    n, cin, h, w = x_nchw.shape
    cout = conv_w.shape[0]
    assert h % 2 == 0 and w % 2 == 0, "AvgPool2d(2,2) needs even H, W"
    ho, wo = h // 2, w // 2
    ro = n * ho * wo                  # number of 2x2 windows == output rows
    r_true = n * h * w                # BN sample count (pre-pool pixels)

    # --- layout glue: cast first (2 B/elt moves), then NCHW -> (4, Ro, Cin) --
    x = x_nchw.astype(compute_dtype)
    x = jnp.transpose(x, (0, 2, 3, 1))                        # NHWC
    x = x.reshape(n, ho, 2, wo, 2, cin)
    x = jnp.transpose(x, (2, 4, 0, 1, 3, 5)).reshape(4, ro, cin)

    # --- row tiling (TR multiple of 16 so bf16 reshapes stay tile-aligned) --
    tr = max(16, min(_round_up(tile_rows, 16), _round_up(ro, 16)))
    ro_pad = _round_up(ro, tr * num_stats_shards)
    if ro_pad != ro:                  # padded rows contribute 0 to BN sums
        x = jnp.pad(x, ((0, 0), (0, ro_pad - ro), (0, 0)))
    n_tiles = ro_pad // tr
    tiles_per_shard = n_tiles // num_stats_shards

    # --- lane-dense channels: pad Cout to a multiple of 128 -----------------
    cout_p = _round_up(cout, 128)
    wmat = jnp.transpose(conv_w.reshape(cout, cin), (1, 0)).astype(compute_dtype)
    if cout_p != cout:
        wmat = jnp.pad(wmat, ((0, 0), (0, cout_p - cout)))
    gamma_p = jnp.pad(gamma.astype(jnp.float32), (0, cout_p - cout),
                      constant_values=1.0)
    beta_p = jnp.pad(beta.astype(jnp.float32), (0, cout_p - cout))

    # --- VMEM budget: ~2x the per-step working set, capped for v7x (64 MiB) -
    cd_b = jnp.dtype(compute_dtype).itemsize
    out_b = jnp.dtype(out_dtype).itemsize
    working = (2 * (4 * tr * cin * cd_b)        # x tile, double-buffered
               + 2 * (cin * cout_p * cd_b)      # W, double-buffered
               + 2 * (tr * cout_p * out_b)      # out tile, double-buffered
               + 2 * (4 * tr * cout_p * 4))     # f32 y + epilogue temporaries
    vmem_limit = int(min(max(2 * working, 32 << 20), 64 << 20))

    # ---- pass 1: global BN batch statistics (sharded over row tiles) -------
    sum_p, sq_p = pl.pallas_call(
        _stats_kernel,
        out_shape=(jax.ShapeDtypeStruct((num_stats_shards, 8, cout_p), jnp.float32),
                   jax.ShapeDtypeStruct((num_stats_shards, 8, cout_p), jnp.float32)),
        grid=(num_stats_shards, tiles_per_shard),
        in_specs=[
            pl.BlockSpec((4, tr, cin),
                         lambda c, i: (0, c * tiles_per_shard + i, 0)),
            pl.BlockSpec((cin, cout_p), lambda c, i: (0, 0)),
        ],
        out_specs=(pl.BlockSpec((1, 8, cout_p), lambda c, i: (c, 0, 0)),
                   pl.BlockSpec((1, 8, cout_p), lambda c, i: (c, 0, 0))),
        compiler_params=pltpu.CompilerParams(
            dimension_semantics=("parallel", "arbitrary"),
            vmem_limit_bytes=vmem_limit),
    )(x, wmat)

    ysum = jnp.sum(sum_p, axis=(0, 1))                        # (CoutP,)
    ysq = jnp.sum(sq_p, axis=(0, 1))
    mean = ysum / float(r_true)
    # TODO(synk): E[y^2] - mean^2 in f32 can lose precision for very large
    # batches with non-small means (clamp hides, does not fix, cancellation).
    var = jnp.maximum(ysq / float(r_true) - mean * mean, 0.0)  # biased var
    inv_std = jax.lax.rsqrt(var + BN_EPS)
    # Fold BN affine AND the 2x2 average-pool 1/4 into scale/shift:
    #   0.25 * relu(y*s + b) == relu(y*(0.25*s) + 0.25*b)   (ReLU pos. homog.)
    scale = (0.25 * gamma_p * inv_std)[None, :]               # (1, CoutP)
    shift = (0.25 * (beta_p - mean * gamma_p * inv_std))[None, :]
    # TODO(synk): nn.BatchNorm2d running_mean/running_var buffer updates
    # (train-time momentum bookkeeping) are not modeled.

    # ---- pass 2: conv -> BN -> ReLU -> 2x2 avg pool, tiled over rows -------
    out_flat = pl.pallas_call(
        _apply_kernel,
        out_shape=jax.ShapeDtypeStruct((ro_pad, cout_p), out_dtype),
        grid=(n_tiles,),
        in_specs=[
            pl.BlockSpec((4, tr, cin), lambda i: (0, i, 0)),
            pl.BlockSpec((cin, cout_p), lambda i: (0, 0)),
            pl.BlockSpec((1, cout_p), lambda i: (0, 0)),
            pl.BlockSpec((1, cout_p), lambda i: (0, 0)),
        ],
        out_specs=pl.BlockSpec((tr, cout_p), lambda i: (i, 0)),
        compiler_params=pltpu.CompilerParams(
            dimension_semantics=("parallel",),
            vmem_limit_bytes=vmem_limit),
    )(x, wmat, scale, shift)

    # --- layout glue back to NCHW --------------------------------------------
    out = out_flat[:ro, :cout].reshape(n, ho, wo, cout)
    return jnp.transpose(out, (0, 3, 1, 2))


def _reference(x_nchw, conv_w, gamma, beta, *, compute_dtype=jnp.float32):
    """Pure-JAX reference: Conv1x1 -> BN(batch stats) -> ReLU -> AvgPool2d."""
    n, cin, h, w = x_nchw.shape
    cout = conv_w.shape[0]
    x = jnp.transpose(x_nchw, (0, 2, 3, 1)).reshape(-1, cin).astype(compute_dtype)
    wmat = conv_w.reshape(cout, cin).T.astype(compute_dtype)
    y = jnp.dot(x, wmat, preferred_element_type=jnp.float32)
    mean = jnp.mean(y, axis=0, keepdims=True)
    var = jnp.mean(jnp.square(y - mean), axis=0, keepdims=True)   # biased
    y = (y - mean) * jax.lax.rsqrt(var + BN_EPS) * gamma + beta
    y = jnp.maximum(y, 0.0).reshape(n, h, w, cout)
    y = (y[:, 0::2, 0::2] + y[:, 0::2, 1::2] +
         y[:, 1::2, 0::2] + y[:, 1::2, 1::2]) * 0.25
    return y.transpose(0, 3, 1, 2)


if __name__ == "__main__":
    # Small shapes consistent with a DenseNet transition layer (Cout = Cin//2).
    N, Cin, H, W = 2, 32, 16, 16
    Cout = Cin // 2

    key = jax.random.PRNGKey(0)
    kx, kw, kg, kb = jax.random.split(key, 4)
    x = jax.random.normal(kx, (N, Cin, H, W), dtype=jnp.float32)
    conv_w = jax.random.normal(kw, (Cout, Cin, 1, 1), dtype=jnp.float32) * 0.1
    gamma = 1.0 + 0.1 * jax.random.normal(kg, (Cout,), dtype=jnp.float32)
    beta = 0.1 * jax.random.normal(kb, (Cout,), dtype=jnp.float32)

    # tile_rows=32 so the tiny demo still exercises a multi-step grid
    # (2 stats shards x 2 tiles each + 4 pipelined apply-pass tiles).
    out = transition_layer(x, conv_w, gamma, beta, tile_rows=32)
    out = jax.block_until_ready(out)
    assert out.shape == (N, Cout, H // 2, W // 2), out.shape

    # Tight check against a reference with identical numerics (bf16 matmul
    # operands, f32 accumulation / BN / ReLU / pool).
    ref_bf16 = _reference(x, conv_w, gamma, beta, compute_dtype=jnp.bfloat16)
    np.testing.assert_allclose(np.asarray(out), np.asarray(ref_bf16),
                               atol=2e-3, rtol=2e-3)

    # Loose sanity check against the full-f32 PyTorch-equivalent math
    # (difference is only the bf16 rounding of the matmul operands).
    ref_f32 = _reference(x, conv_w, gamma, beta, compute_dtype=jnp.float32)
    np.testing.assert_allclose(np.asarray(out), np.asarray(ref_f32),
                               atol=6e-2, rtol=6e-2)

    print("KERNEL_OK")
</pallas_src>

<mosaic_0001>
module attributes {stable_mosaic.version = 11 : i64} {
  func.func @_stats_kernel(%arg0: i32, %arg1: i32, %arg2: memref<4x32x32xbf16, #tpu.memory_space<vmem>>, %arg3: memref<32x128xbf16, #tpu.memory_space<vmem>>, %arg4: memref<1x8x128xf32, #tpu.memory_space<vmem>>, %arg5: memref<1x8x128xf32, #tpu.memory_space<vmem>>) attributes {dimension_semantics = [#tpu.dimension_semantics<parallel>, #tpu.dimension_semantics<arbitrary>], iteration_bounds = array<i64: 2, 2>, scalar_prefetch = 0 : i64, scratch_operands = 0 : i64, tpu.core_type = #tpu.core_type<tc>, window_params = [{transform_indices = @transform_0, window_bounds = array<i64: 4, 32, 32>}, {pipeline_mode = #tpu.pipeline_mode<synchronous>, transform_indices = @transform_1, window_bounds = array<i64: 32, 128>}, {transform_indices = @transform_2, window_bounds = array<i64: 1, 8, 128>}, {transform_indices = @transform_3, window_bounds = array<i64: 1, 8, 128>}]} {
    %c0_i32 = arith.constant 0 : i32
    %0 = arith.cmpi eq, %arg1, %c0_i32 : i32
    %1 = arith.extui %0 : i1 to i32
    %c0_i32_0 = arith.constant 0 : i32
    %2 = arith.cmpi ne, %1, %c0_i32_0 : i32
    scf.if %2 {
      %cst_19 = arith.constant 0.000000e+00 : f32
      %19 = vector.broadcast %cst_19 : f32 to vector<1x8x128xf32>
      %c0_20 = arith.constant 0 : index
      %c0_21 = arith.constant 0 : index
      %c0_22 = arith.constant 0 : index
      %20 = vector.load %arg4[%c0_20, %c0_21, %c0_22] : memref<1x8x128xf32, #tpu.memory_space<vmem>>, vector<1x8x128xf32>
      tpu.vector_store %arg4[%c0_20, %c0_21, %c0_22], %19 {strides = array<i32>} : memref<1x8x128xf32, #tpu.memory_space<vmem>>, vector<1x8x128xf32>,
      %cst_23 = arith.constant 0.000000e+00 : f32
      %21 = vector.broadcast %cst_23 : f32 to vector<1x8x128xf32>
      %c0_24 = arith.constant 0 : index
      %c0_25 = arith.constant 0 : index
      %c0_26 = arith.constant 0 : index
      %22 = vector.load %arg5[%c0_24, %c0_25, %c0_26] : memref<1x8x128xf32, #tpu.memory_space<vmem>>, vector<1x8x128xf32>
      tpu.vector_store %arg5[%c0_24, %c0_25, %c0_26], %21 {strides = array<i32>} : memref<1x8x128xf32, #tpu.memory_space<vmem>>, vector<1x8x128xf32>,
    } else {
    }
    %c0 = arith.constant 0 : index
    %c0_1 = arith.constant 0 : index
    %c0_2 = arith.constant 0 : index
    %3 = vector.load %arg2[%c0, %c0_1, %c0_2] : memref<4x32x32xbf16, #tpu.memory_space<vmem>>, vector<4x32x32xbf16>
    %4 = vector.shape_cast %3 : vector<4x32x32xbf16> to vector<128x32xbf16>
    %c0_3 = arith.constant 0 : index
    %c0_4 = arith.constant 0 : index
    %5 = vector.load %arg3[%c0_3, %c0_4] : memref<32x128xbf16, #tpu.memory_space<vmem>>, vector<32x128xbf16>
    %cst = arith.constant dense<0.000000e+00> : vector<128x128xf32>
    %6 = tpu.matmul %4, %5, %cst {dimension_numbers = #tpu.dot_dimension_numbers<[1], [0], [0], [1], [0, 0, 1, 1], [], []>} : vector<128x32xbf16>, vector<32x128xbf16>, vector<128x128xf32> -> vector<128x128xf32>
    %7 = vector.shape_cast %6 : vector<128x128xf32> to vector<16x8x128xf32>
    %c0_5 = arith.constant 0 : index
    %c0_6 = arith.constant 0 : index
    %c0_7 = arith.constant 0 : index
    %8 = vector.load %arg4[%c0_5, %c0_6, %c0_7] : memref<1x8x128xf32, #tpu.memory_space<vmem>>, vector<1x8x128xf32>
    %cst_8 = arith.constant dense<0.000000e+00> : vector<8x128xf32>
    %9 = vector.multi_reduction <add>, %7, %cst_8 [0] : vector<16x8x128xf32> to vector<8x128xf32>
    %10 = vector.shape_cast %9 : vector<8x128xf32> to vector<1x8x128xf32>
    %11 = arith.addf %8, %10 : vector<1x8x128xf32>
    %c0_9 = arith.constant 0 : index
    %c0_10 = arith.constant 0 : index
    %c0_11 = arith.constant 0 : index
    %12 = vector.load %arg4[%c0_9, %c0_10, %c0_11] : memref<1x8x128xf32, #tpu.memory_space<vmem>>, vector<1x8x128xf32>
    tpu.vector_store %arg4[%c0_9, %c0_10, %c0_11], %11 {strides = array<i32>} : memref<1x8x128xf32, #tpu.memory_space<vmem>>, vector<1x8x128xf32>,
    %c0_12 = arith.constant 0 : index
    %c0_13 = arith.constant 0 : index
    %c0_14 = arith.constant 0 : index
    %13 = vector.load %arg5[%c0_12, %c0_13, %c0_14] : memref<1x8x128xf32, #tpu.memory_space<vmem>>, vector<1x8x128xf32>
    %14 = arith.mulf %7, %7 : vector<16x8x128xf32>
    %cst_15 = arith.constant dense<0.000000e+00> : vector<8x128xf32>
    %15 = vector.multi_reduction <add>, %14, %cst_15 [0] : vector<16x8x128xf32> to vector<8x128xf32>
    %16 = vector.shape_cast %15 : vector<8x128xf32> to vector<1x8x128xf32>
    %17 = arith.addf %13, %16 : vector<1x8x128xf32>
    %c0_16 = arith.constant 0 : index
    %c0_17 = arith.constant 0 : index
    %c0_18 = arith.constant 0 : index
    %18 = vector.load %arg5[%c0_16, %c0_17, %c0_18] : memref<1x8x128xf32, #tpu.memory_space<vmem>>, vector<1x8x128xf32>
    tpu.vector_store %arg5[%c0_16, %c0_17, %c0_18], %17 {strides = array<i32>} : memref<1x8x128xf32, #tpu.memory_space<vmem>>, vector<1x8x128xf32>,
    return
  }
  func.func @transform_0(%arg0: i32, %arg1: i32) -> (i32, i32, i32) {
    %c2_i32 = arith.constant 2 : i32
    %0 = arith.muli %arg0, %c2_i32 : i32
    %1 = arith.addi %0, %arg1 : i32
    %c0_i32 = arith.constant 0 : i32
    %c0_i32_0 = arith.constant 0 : i32
    %c0_i32_1 = arith.constant 0 : i32
    return %c0_i32, %1, %c0_i32_0 : i32, i32, i32
  }
  func.func @transform_1(%arg0: i32, %arg1: i32) -> (i32, i32) {
    %c0_i32 = arith.constant 0 : i32
    %c0_i32_0 = arith.constant 0 : i32
    %c0_i32_1 = arith.constant 0 : i32
    return %c0_i32, %c0_i32_0 : i32, i32
  }
  func.func @transform_2(%arg0: i32, %arg1: i32) -> (i32, i32, i32) {
    %c0_i32 = arith.constant 0 : i32
    %c0_i32_0 = arith.constant 0 : i32
    %c0_i32_1 = arith.constant 0 : i32
    return %arg0, %c0_i32, %c0_i32_0 : i32, i32, i32
  }
  func.func @transform_3(%arg0: i32, %arg1: i32) -> (i32, i32, i32) {
    %c0_i32 = arith.constant 0 : i32
    %c0_i32_0 = arith.constant 0 : i32
    %c0_i32_1 = arith.constant 0 : i32
    return %arg0, %c0_i32, %c0_i32_0 : i32, i32, i32
  }
}

</mosaic_0001>

<bundles_post_ra>
// kernel: tpu_custom_call.1
= control target key start
LH: loop header
LB: loop body
LE: loop exit
PB: predicated region body
PF: predicated region fallthrough
CT: control target
= control target key end

     0   :  { %s1278_s0 = inlined_call_operand.vmem [shape: bf16[4,128,32], index: 0, kind: input, shape index: {}]   ;;  %s1279_s1 = inlined_call_operand.vmem [shape: bf16[32,128], index: 1, kind: input, shape index: {}]   ;;  %s1280_s2 = inlined_call_operand.hbm [shape: f32[2,8,128], index: 2, kind: output, shape index: {0}]   ;;  %s1281_s3 = inlined_call_operand.hbm [shape: f32[2,8,128], index: 3, kind: output, shape index: {1}]  }
   0x1   :  { %1282 = sst [smem:[#allocation9_spill]] %s1278_s0 }
   0x2   :  { %1283 = sst [smem:[#allocation10_spill]] %s1279_s1 }
   0x3   :  { %9 = vsyncpa [#allocation4], 0 }
   0x4   :  { %11 = vsyncpa [#allocation4 + $0x1], 0 }
   0x5   :  { %12 = vsyncpa [#allocation6], 0 }
   0x6   :  { %14 = vsyncpa [#allocation6 + $0x1], 0  ;;  %s1040_s12 = smov 0   ;;  %s1042_s13 = smov 0  }
   0x7   :  { %s1044_s14 = smov 0   ;;  %s1046_s15 = smov 0  }
   0x8   :  { %s1048_s16 = smov 0   ;;  %s1050_s17 = smov 0  }
   0x9   :  { %s1052_s18 = smov 0   ;;  %s1054_s19 = smov 0  }
   0xa   :  { %s1056_s20 = smov 0   ;;  %s1058_s21 = smov 0  }
   0xb LB: > { %s700_s22 = sadd.s32 4294967295, %s1015_s21   ;;  %s701_s23 = sadd.s32 4294967294, %s1015_s21   ;;  %s1015_s21 = sphi %s1058_s21, %s20_s21   ;;  %s1011_s20 = sphi %s1056_s20, %s1297_s20   ;;  %s1007_s19 = sphi %s1054_s19, %s1296_s19   ;;  %s1003_s18 = sphi %s1052_s18, %s1295_s18   ;;  %s999_s17 = sphi %s1050_s17, %s1294_s17   ;;  %s995_s16 = sphi %s1048_s16, %s1293_s16   ;;  %s991_s15 = sphi %s1046_s15, %s1292_s15   ;;  %s987_s14 = sphi %s1044_s14, %s1291_s14   ;;  %s983_s13 = sphi %s1042_s13, %s1290_s13   ;;  %s979_s12 = sphi %s1040_s12, %s1289_s12  }
   0xc   : > { %s29_s24 = sadd.s32 1, %s1007_s19  ;;  %s32_s25 = sadd.s32 1, %s1011_s20 }
   0xd   : > { %p30_p0 = scmp.ge.s32.totalorder %s29_s24, 2  ;;  %s702_s26 = sshll.u32 %s1011_s20, 1 }
   0xe   : > { %s1096_s27 = sadd.s32 %s1007_s19, %s702_s26  ;;  %s43_s28 = sadd.s32 1, %s995_s16 }
   0xf   : > { %s1299_s24 = smov (%p30_p0, %s29_s24), 0  ;;  %s1301_s25 = smov (!%p30_p0, %s32_s25), %s1011_s20 }
  0x10   : > { %p50_p1 = scmp.ne.s32.totalorder %s995_s16, %s991_s15  ;;  %p51_p2 = scmp.eq.s32.totalorder %s1015_s21, 0 }
  0x11   : > { %p34_p3 = scmp.ge.s32.totalorder %s1301_s25, 2  ;;  %s90_s29 = sadd.s32 1, %s987_s14 }
  0x12   : > { %p1106_p4 = por %p51_p2, %p50_p1  ;;  %p100_p5 = scmp.ne.s32.totalorder %s987_s14, %s983_s13 }
  0x13   : > { %s1303_s25 = smov (%p34_p3, %s1301_s25), 0  ;;  %p101_p6 = scmp.eq.s32.totalorder %s700_s22, 3 }
  0x14   : > { %p106_p7 = scmp.ne.s32.totalorder %s983_s13, %s979_s12  ;;  %s703_s4 = sshll.u32 %s1303_s25, 1 }
  0x15   : > { %s87_s5 = ssub.s32 %s1011_s20, %s1303_s25  ;;  %s39_s6 = sadd.s32 %s703_s4, %s1299_s24 }
  0x16   : > { %p88_p8 = scmp.eq.s32.totalorder %s87_s5, 0  ;;  %s40_s7 = ssub.s32 %s1096_s27, %s39_s6 }
  0x17   : > { %p1121_p9 = por %p101_p6, %p100_p5  ;;  %p41_p10 = scmp.eq.s32.totalorder %s40_s7, 0 }
  0x18   : > { %p107_p11 = scmp.eq.s32.totalorder %s701_s23, 3  ;;  %p705_p13 = scmp.ge.s32.totalorder %s1015_s21, 4 }
  0x19   : > { %s1126_s9 = scalar_select %p88_p8, %s987_s14, %s90_s29  }
  0x1a   : > { %s1129_s10 = scalar_select %p41_p10, %s995_s16, %s43_s28  }
  0x1b   : > { %p1131_p12 = por %p107_p11, %p106_p7  ;;  %152 = sbr.rel (%p705_p13) target bundleno = 46 (0x2e), region = 20 }
  0x20   : > { %155 = sbr.rel (!%p1106_p4) target bundleno = 46 (0x2e), region = 24  ;;  %s157_s22 = sand.u32 (%p1106_p4), 1, %s995_s16  }
  0x21   : > { %s739_s26 = sshll.u32 (%p1106_p4), %s1096_s27, 4  ;;  %s706_s4 = sshll.u32 (%p1106_p4), %s157_s22, 6 }
  0x22   : > { %s1287_s0 = sld [smem:[#allocation9_spill]] (%p1106_p4)  ;;  %s159_s5 = scalar_lea.vmem (%p1106_p4), [#allocation2], %s706_s4 }
  0x28   : > { %s164_s28 = scalar_lea.vmem %s1287_s0, %s739_s26 }
  0x29   : > { %v181_v0 = vld [vmem:[%s164_s28] sm:$0xff]   ;;  %v185_v1 = vld [vmem:[%s164_s28 + $0x8] sm:$0xff]  }
  0x2a   : > { %v189_v2 = vld [vmem:[%s164_s28 + $0x40] sm:$0xff]   ;;  %182 = vst [vmem:[%s159_s5] sm:$0xff] %v181_v0   ;;  %186 = vst [vmem:[%s159_s5 + $0x8] sm:$0xff] %v185_v1   ;;  %v193_v3 = vld [vmem:[%s164_s28 + $0x48] sm:$0xff]  }
  0x2b   : > { %190 = vst [vmem:[%s159_s5 + $0x10] sm:$0xff] %v189_v2   ;;  %v197_v4 = vld [vmem:[%s164_s28 + $0x80] sm:$0xff]   ;;  %v201_v5 = vld [vmem:[%s164_s28 + $0x88] sm:$0xff]   ;;  %194 = vst [vmem:[%s159_s5 + $0x18] sm:$0xff] %v193_v3  }
  0x2c   : > { %198 = vst [vmem:[%s159_s5 + $0x20] sm:$0xff] %v197_v4   ;;  %202 = vst [vmem:[%s159_s5 + $0x28] sm:$0xff] %v201_v5   ;;  %v205_v6 = vld [vmem:[%s164_s28 + $0xc0] sm:$0xff]   ;;  %v209_v7 = vld [vmem:[%s164_s28 + $0xc8] sm:$0xff]  }
  0x2d   : > { %206 = vst [vmem:[%s159_s5 + $0x30] sm:$0xff] %v205_v6   ;;  %210 = vst [vmem:[%s159_s5 + $0x38] sm:$0xff] %v209_v7  }
  0x2e PF: > { %p710_p0 = scmp.ge.s32.totalorder %s1015_s21, 1  ;;  %p267_p1 = scmp.lt.s32.totalorder %s1015_s21, 5 }
  0x30   : > { %p268_p2 = pnand %p710_p0, %p267_p1 }
  0x31   : > { %s274_s27 = sand.u32 (!%p268_p2), 1, %s991_s15   ;;  %s1147_s30 = sand.u32 (!%p268_p2), 1, %s983_s13  }
  0x32   : > { %271 = sbr.rel (%p268_p2) target bundleno = 343 (0x157), region = 65  ;;  %s711_s6 = sshll.u32 (!%p268_p2), %s274_s27, 6 }
  0x33   : > { %s712_s7 = sshll.u32 (!%p268_p2), %s1147_s30, 3  ;;  %s1150_s22 = scalar_lea.vmem (!%p268_p2), [#allocation2], %s711_s6 }
  0x34   : > { %s1152_s26 = scalar_lea.vmem (!%p268_p2), [#allocation3], %s712_s7  ;;  %s1154_s4 = scalar_lea.vmem (!%p268_p2), [#allocation5], %s712_s7 }
  0x35   : > { %p714_p3 = scmp.ne.s32.totalorder (!%p268_p2), %s999_s17, 0 }
  0x37   : > { %309 = sbr.rel (%p714_p3) target bundleno = 62 (0x3e), region = 73 }
  0x3c   : > { %v1017_v8 = vmov 0.0  }
  0x3d   : > { %310 = vst [vmem:[%s1152_s26] sm:$0xff] %v1017_v8  ;;  %311 = vst [vmem:[%s1154_s4] sm:$0xff] %v1017_v8 }
  0x3e PF: > { %s1288_s1 = sld [smem:[#allocation10_spill]]  ;;  %vm384_vm0 = vcmask 261120   ;;  %v869_v11 = vld [vmem:[%s1150_s22] sm:$0xff]   ;;  %v870_v12 = vld [vmem:[%s1150_s22 + $0x8] sm:$0xff]   ;;  %v871_v13 = vld [vmem:[%s1150_s22 + $0x10] sm:$0xff]   ;;  %s735_s17 = sshll.u32 %s1003_s18, 7 }
  0x3f   : > { %754 = vmatprep.mubr.msk.bf16.mxu0 %vm384_vm0, %v869_v11  ;;  %v873_v14 = vld [vmem:[%s1150_s22 + $0x20] sm:$0xff]   ;;  %v874_v15 = vld [vmem:[%s1150_s22 + $0x28] sm:$0xff]   ;;  %v875_v16 = vld [vmem:[%s1150_s22 + $0x30] sm:$0xff]   ;;  %s577_s5 = sshll.u32 %s1152_s26, 4  ;;  %s590_s27 = sshll.u32 %s1154_s4, 4  ;;  %s1191_s5 = int_to_ptr.vmem [resolvable:$true] %s577_s5  ;;  %s1199_s27 = int_to_ptr.vmem [resolvable:$true] %s590_s27 }
  0x40   : > { %762 = vmatprep.mubr.msk.bf16.mxu1 %vm384_vm0, %v873_v14  ;;  %v872_v17 = vld [vmem:[%s1150_s22 + $0x18] sm:$0xff]   ;;  %s1197_s23 = scalar_lea.hbm %s1281_s3, %s735_s17  ;;  %s559_s29 = scalar_lea.sflag [#allocation4], %s1147_s30 }
  0x41   : > { %v876_v18 = vld [vmem:[%s1150_s22 + $0x38] sm:$0xff]   ;;  %s1189_s22 = scalar_lea.hbm %s1280_s2, %s735_s17  ;;  %s877_s28 = scalar_lea.vmem %s1191_s5, 128 }
  0x42   : > { %p878_p4 = scmp.ne.s32.totalorder %s1191_s5, %s877_s28  ;;  %s1018_s6 = smov [#allocation3]  }
  0x43   : > { %s881_s7 = sshll.u32 %s1018_s6, 4  ;;  %s882_s7 = int_to_ptr.vmem [resolvable:$false] %s881_s7 }
  0x44   : > { %v867_v9 = vld [vmem:[%s1288_s1 + $0x8] sm:$0xff]   ;;  %v868_v10 = vld [vmem:[%s1288_s1] sm:$0xff]   ;;  %p879_p5 = pnand %p878_p4, %p1121_p9  ;;  %s883_s0 = scalar_lea.vmem %s882_s7, 256 }
  0x45   : > { %750 = vmatprep.subr.bf16.mxu0 %v867_v9  ;;  %770 = vmatprep.subr.bf16.mxu1 %v867_v9  ;;  %p884_p7 = scmp.lt.s32.totalorder %s1191_s5, %s882_s7  ;;  %p885_p8 = scmp.lt.s32.totalorder %s883_s0, %s877_s28 }
  0x46   : > { %751 = vmatpush3.bf16.msra.mxu0 %v867_v9  ;;  %772 = vmatpush3.bf16.msra.mxu1 %v867_v9  ;;  %p880_p6 = pneg %p879_p5 }
  0x47   : > { %752 = vmatprep.subr.bf16.mxu0 %v868_v10  ;;  %771 = vmatprep.subr.bf16.mxu1 %v868_v10  ;;  %p886_p10 = por %p885_p8, %p884_p7 }
  0x49   : > { %p887_p11 = pnand %p886_p10, %p880_p6 }
  0x4a   : > { %753 = vmatpush3.bf16.msra.mxu0 %v868_v10  ;;  %773 = vmatpush3.bf16.msra.mxu1 %v868_v10 }
  0x4d   : > { %755 = vmatmul.mubr.msk.bf16.vlgmr.msra.gmra.mxu0 %vm384_vm0, %v870_v12  ;;  %763 = vmatmul.mubr.msk.bf16.vlgmr.msra.gmra.mxu1 %vm384_vm0, %v874_v15 }
  0x4e   : > { %758 = vmatprep.mubr.msk.bf16.mxu0 %vm384_vm0, %v871_v13  ;;  %766 = vmatprep.mubr.msk.bf16.mxu1 %vm384_vm0, %v875_v16  ;;  %v506_v13 = vld [vmem:[%s1152_s26] sm:$0xff] }
  0x55   : > { %759 = vmatmul.mubr.msk.bf16.gmra.mxu0 %vm384_vm0, %v872_v17  ;;  %767 = vmatmul.mubr.msk.bf16.gmra.mxu1 %vm384_vm0, %v876_v18  ;;  %v524_v17 = vld [vmem:[%s1154_s4] sm:$0xff] }
 0x10d   : > { %v756_v19 = vpop.f32.mrf.mxu0  ;;  %v764_v20 = vpop.f32.mrf.mxu1 }
 0x10e   : > { %v527_v30 = vmul.f32 %v756_v19, %v756_v19  ;;  %v535_v61 = vmul.f32 %v764_v20, %v764_v20 }
 0x10f   : > { %v443_v21 = vpop.f32.mrf.mxu0  ;;  %v475_v23 = vpop.f32.mrf.mxu1 }
 0x110   : > { %v525_v25 = vmul.f32 %v443_v21, %v443_v21  ;;  %v533_v54 = vmul.f32 %v475_v23, %v475_v23 }
 0x111   : > { %v757_v22 = vpop.f32.mrf.mxu0  ;;  %v765_v29 = vpop.f32.mrf.mxu1 }
 0x112   : > { %v528_v34 = vmul.f32 %v757_v22, %v757_v22  ;;  %v536_v0 = vmul.f32 %v765_v29, %v765_v29 }
 0x113   : > { %v446_v24 = vpop.f32.mrf.mxu0  ;;  %v478_v38 = vpop.f32.mrf.mxu1 }
 0x114   : > { %v507_v26 = vadd.f32 %v446_v24, %v443_v21  ;;  %v526_v27 = vmul.f32 %v446_v24, %v446_v24  ;;  %v534_v58 = vmul.f32 %v478_v38, %v478_v38 }
 0x115   : > { %v760_v28 = vpop.f32.mrf.mxu0  ;;  %v768_v46 = vpop.f32.mrf.mxu1 }
 0x116   : > { %v508_v31 = vadd.f32 %v756_v19, %v507_v26  ;;  %v541_v32 = vadd.f32 %v526_v27, %v525_v25  ;;  %v531_v47 = vmul.f32 %v760_v28, %v760_v28  ;;  %v539_v10 = vmul.f32 %v768_v46, %v768_v46 }
 0x117   : > { %v459_v33 = vpop.f32.mrf.mxu0  ;;  %v491_v53 = vpop.f32.mrf.mxu1 }
 0x118   : > { %v542_v35 = vadd.f32 %v541_v32, %v527_v30  ;;  %v509_v36 = vadd.f32 %v757_v22, %v508_v31  ;;  %v529_v40 = vmul.f32 %v459_v33, %v459_v33  ;;  %v537_v5 = vmul.f32 %v491_v53, %v491_v53 }
 0x119   : > { %v761_v37 = vpop.f32.mrf.mxu0  ;;  %v769_v60 = vpop.f32.mrf.mxu1 }
 0x11a   : > { %v510_v39 = vadd.f32 %v509_v36, %v459_v33  ;;  %v543_v41 = vadd.f32 %v542_v35, %v528_v34  ;;  %v532_v50 = vmul.f32 %v761_v37, %v761_v37  ;;  %v540_v14 = vmul.f32 %v769_v60, %v769_v60 }
 0x11b   : > { %v462_v42 = vpop.f32.mrf.mxu0  ;;  %v494_v3 = vpop.f32.mrf.mxu1 }
 0x11c   : > { %v544_v43 = vadd.f32 %v543_v41, %v529_v40  ;;  %v511_v44 = vadd.f32 %v510_v39, %v462_v42  ;;  %v530_v45 = vmul.f32 %v462_v42, %v462_v42  ;;  %v538_v9 = vmul.f32 %v494_v3, %v494_v3 }
 0x11e   : > { %v512_v48 = vadd.f32 %v760_v28, %v511_v44  ;;  %v545_v49 = vadd.f32 %v544_v43, %v530_v45 }
 0x120   : > { %v513_v51 = vadd.f32 %v761_v37, %v512_v48  ;;  %v546_v52 = vadd.f32 %v545_v49, %v531_v47 }
 0x122   : > { %v547_v55 = vadd.f32 %v546_v52, %v532_v50  ;;  %v514_v56 = vadd.f32 %v513_v51, %v475_v23 }
 0x124   : > { %v515_v57 = vadd.f32 %v514_v56, %v478_v38  ;;  %v548_v59 = vadd.f32 %v547_v55, %v533_v54 }
 0x126   : > { %v516_v62 = vadd.f32 %v764_v20, %v515_v57  ;;  %v549_v63 = vadd.f32 %v548_v59, %v534_v58 }
 0x128   : > { %v550_v1 = vadd.f32 %v549_v63, %v535_v61  ;;  %v517_v2 = vadd.f32 %v765_v29, %v516_v62 }
 0x12a   : > { %v518_v4 = vadd.f32 %v517_v2, %v491_v53  ;;  %v551_v6 = vadd.f32 %v550_v1, %v536_v0 }
 0x12c   : > { %v552_v7 = vadd.f32 %v551_v6, %v537_v5  ;;  %v519_v8 = vadd.f32 %v518_v4, %v494_v3 }
 0x12e   : > { %v520_v11 = vadd.f32 %v768_v46, %v519_v8  ;;  %v553_v12 = vadd.f32 %v552_v7, %v538_v9 }
 0x130   : > { %v521_v15 = vadd.f32 %v769_v60, %v520_v11  ;;  %v554_v16 = vadd.f32 %v553_v12, %v539_v10 }
 0x132   : > { %v555_v18 = vadd.f32 %v554_v16, %v540_v14  ;;  %v522_v19 = vadd.f32 %v521_v15, %v506_v13 }
 0x134   : > { %523 = vst [vmem:[%s1152_s26] sm:$0xff] %v522_v19  ;;  %v556_v20 = vadd.f32 %v555_v18, %v524_v17 }
 0x135   : > { %890 = shalt.err (!%p887_p11)
}
 0x136   : > { %s891_s26 = scalar_lea.hbm %s1189_s22, 128  ;;  %s895_s15 = scalar_lea.hbm %s1280_s2, 256 }
 0x137   : > { %p892_p13 = scmp.ne.s32.totalorder %s1189_s22, %s891_s26  ;;  %p896_p2 = scmp.lt.s32.totalorder %s1189_s22, %s1280_s2 }
 0x138   : > { %p897_p3 = scmp.lt.s32.totalorder %s895_s15, %s891_s26 }
 0x139   : > { %p893_p0 = pnand %p892_p13, %p1121_p9 }
 0x13a   : > { %p898_p4 = por %p897_p3, %p896_p2 }
 0x13b   : > { %p894_p1 = pneg %p893_p0 }
 0x13d   : > { %p899_p5 = pnand %p898_p4, %p894_p1 }
 0x13f   : > { %902 = shalt.err (!%p899_p5)
}
 0x140   : > { %774 = dma.vmem_to_hbm [thread:$0]  (%p1121_p9), %s1191_s5, 128, %s1189_s22, %s559_s29   ;;  %557 = vst [vmem:[%s1154_s4] sm:$0xff] %v556_v20 }
 0x141   : > { %s564_s0 = scalar_lea.sflag [#allocation6], %s1147_s30  ;;  %s903_s28 = scalar_lea.vmem %s1199_s27, 128 }
 0x142   : > { %p904_p6 = scmp.ne.s32.totalorder %s1199_s27, %s903_s28  ;;  %s1019_s1 = smov [#allocation5]  }
 0x143   : > { %s907_s7 = sshll.u32 %s1019_s1, 4  ;;  %s908_s7 = int_to_ptr.vmem [resolvable:$false] %s907_s7 }
 0x144   : > { %p905_p7 = pnand %p904_p6, %p1121_p9  ;;  %s909_s26 = scalar_lea.vmem %s908_s7, 256 }
 0x145   : > { %p910_p10 = scmp.lt.s32.totalorder %s1199_s27, %s908_s7  ;;  %p911_p11 = scmp.lt.s32.totalorder %s909_s26, %s903_s28 }
 0x146   : > { %p906_p8 = pneg %p905_p7 }
 0x147   : > { %p912_p13 = por %p911_p11, %p910_p10 }
 0x149   : > { %p913_p0 = pnand %p912_p13, %p906_p8 }
 0x14b   : > { %916 = shalt.err (!%p913_p0)
}
 0x14c   : > { %s917_s4 = scalar_lea.hbm %s1197_s23, 128  ;;  %s921_s22 = scalar_lea.hbm %s1281_s3, 256 }
 0x14d   : > { %p918_p1 = scmp.ne.s32.totalorder %s1197_s23, %s917_s4  ;;  %p922_p4 = scmp.lt.s32.totalorder %s1197_s23, %s1281_s3 }
 0x14e   : > { %p923_p5 = scmp.lt.s32.totalorder %s921_s22, %s917_s4 }
 0x14f   : > { %p919_p2 = pnand %p918_p1, %p1121_p9 }
 0x150   : > { %p924_p6 = por %p923_p5, %p922_p4 }
 0x151   : > { %p920_p3 = pneg %p919_p2 }
 0x153   : > { %p925_p7 = pnand %p924_p6, %p920_p3 }
 0x155   : > { %928 = shalt.err (!%p925_p7)
}
 0x156   : > { %775 = dma.vmem_to_hbm [thread:$0]  (%p1121_p9), %s1199_s27, 128, %s1197_s23, %s564_s0  }
 0x157 PF: > { %p785_p8 = scmp.ge.s32.totalorder %s1015_s21, 2  ;;  %s602_s18 = sand.u32 1, %s979_s12  }
 0x158   : > { %s603_s15 = scalar_lea.sflag [#allocation4], %s602_s18 }
 0x159   : > { %p779_p10 = pnand %p785_p8, %p1131_p12 }
 0x15b   : > { %p780_p11 = pneg %p779_p10 }
 0x15d   : > { %970 = dma.done.wait (%p780_p11), %s603_s15, 128  }
 0x15e   : > { %972 = vsyncadd (%p780_p11), %s603_s15, 4294967168  ;;  %s612_s6 = scalar_lea.sflag [#allocation6], %s602_s18 }
 0x15f   : > { %974 = dma.done.wait (%p780_p11), %s612_s6, 128  }
 0x160   : > { %976 = vsyncadd (%p780_p11), %s612_s6, 4294967168  ;;  %s20_s21 = sadd.s32 1, %s1015_s21   ;;  %s1289_s12 = smov %s983_s13 }
 0x161   : > { %p17_p13 = scmp.ge.s32.totalorder %s20_s21, 6   ;;  %s1290_s13 = smov %s987_s14 }
 0x162   : > { %s1291_s14 = smov %s1126_s9  ;;  %s1292_s15 = smov %s995_s16 }
 0x163   : > { %s1293_s16 = smov %s1129_s10  ;;  %s1294_s17 = smov %s1007_s19 }
 0x164   : > { %s1295_s18 = smov %s1011_s20  ;;  %s1296_s19 = smov %s1299_s24 }
 0x165   : > { %s1297_s20 = smov %s1303_s25  ;;  %19 = sbr.rel (!%p17_p13) target bundleno = 11 (0xb), region = 130 }
 0x16a   :  { %617 = vsyncpa [#allocation4], 1 }
 0x16b   :  { %619 = vsyncpa [#allocation4 + $0x1], 1 }
 0x16c   :  { %620 = vsyncpa [#allocation6], 1 }
 0x16d   :  { %622 = vsyncpa [#allocation6 + $0x1], 1 }

</bundles_post_ra>
